<compile_context>
chip_gen: v7x
topology: tpu7x:2x2x1
jax: 0.10.0
libtpu: 0.0.40
codegen_flags: <defaults>
</compile_context>

<pallas_src>
import jax
import jax.numpy as jnp
from jax import lax
from jax.experimental import pallas as pl
from jax.experimental.pallas import tpu as pltpu

# ---- module hyper-parameters (dim chosen so that W*C = 128 lanes) ------------
DIM = 8             # channels
KERNEL_SIZE = 16
DILATION = 3
REDUCTION = 16

D_K = 2 * DILATION - 1                                              # 5
D_P = (D_K - 1) // 2                                                # 2
DD_K = KERNEL_SIZE // DILATION + (KERNEL_SIZE // DILATION % 2 - 1)  # 5
DD_P = DILATION * (DD_K - 1) // 2                                   # 6
RED = max(DIM // REDUCTION, 3)                                      # 3
HIDDEN = DIM // RED                                                 # 2
KMAX = max(D_K, DD_K)                                               # 5
SE_ROWS = 8         # SE weight rows padded to one sublane tile (only first HIDDEN live)


# ---------------------------------------------------------------------------
# kernel factory (closes over static geometry)
# ---------------------------------------------------------------------------
def make_dau_kernel(nimg, H, W, C):
    TILE_BH = nimg * H
    WC = W * C

    def kernel(x_ref, t0_ref, b0_ref, ts_ref, bs_ref, w1_ref, b1_ref,
               fc1t_ref, fc2t_ref, o_ref, s_ref):
        x = x_ref[...]                                            # (TILE_BH, WC) f32, u = x
        # static per-row "h within image" ids; mask rows shifted across image edges
        h_ids = lax.broadcasted_iota(jnp.int32, (TILE_BH, WC), 0) % H

        def dw_conv(v, t_ref, bias_ref, k, dil, pad):
            # depthwise k x k conv: k row-shifted copies (XLU roll + VPU mask) packed
            # lane-dense into the bf16 scratch, then ONE (TILE_BH, k*WC) @ (k*WC, WC)
            # MXU matmul applies all column shifts + per-channel tap weights at once.
            for dy in range(k):
                oy = dy * dil - pad
                if oy == 0:
                    sh = v
                else:
                    sh = pltpu.roll(v, shift=(-oy) % TILE_BH, axis=0)
                    valid = (h_ids >= -oy) & (h_ids < H - oy)
                    sh = jnp.where(valid, sh, 0.0)
                s_ref[:, dy * WC:(dy + 1) * WC] = sh.astype(jnp.bfloat16)
            lhs = s_ref[...] if k == KMAX else s_ref[:, :k * WC]
            acc = jnp.dot(lhs, t_ref[...], preferred_element_type=jnp.float32)
            return acc + bias_ref[...]

        # conv0: depthwise 5x5, padding 2 ; conv_spatial: depthwise 5x5, dilation 3, pad 6
        attn = dw_conv(x, t0_ref, b0_ref, D_K, 1, D_P)
        attn = dw_conv(attn, ts_ref, bs_ref, DD_K, DILATION, DD_P)
        # conv1: 1x1 conv == block-diagonal channel matmul over all pixels
        f_x = jnp.dot(attn.astype(jnp.bfloat16), w1_ref[...],
                      preferred_element_type=jnp.float32) + b1_ref[...]

        # squeeze-excite: per-image mean (sublane reduce) -> rank-HIDDEN MLP on VPU/XLU,
        # broadcast back over the image rows.  No zero-padded matmuls, all f32.
        xm = jnp.sum(x.reshape(nimg, H, WC), axis=1) * (1.0 / (H * W))     # (nimg, WC)
        z = jnp.zeros((nimg, WC), jnp.float32)
        for j in range(HIDDEN):
            hj = jnp.sum(xm * fc1t_ref[j:j + 1, :], axis=-1, keepdims=True)   # (nimg, 1)
            z = z + jnp.maximum(hj, 0.0) * fc2t_ref[j:j + 1, :]
        se = pl.reciprocal(1.0 + jnp.exp(-z), approx=True)                    # sigmoid (EUP)
        se_full = jnp.broadcast_to(se[:, None, :], (nimg, H, WC)).reshape(TILE_BH, WC)

        o_ref[...] = se_full * f_x * x                                        # se * f_x * u

    return kernel


# ---------------------------------------------------------------------------
# operand construction (parameter-only; in a real model this is done once)
# ---------------------------------------------------------------------------
def _col_tap_mats(weights, W, C, ksize, dil, pad):
    # vstacked taps: T[dy*WC + (w+ox)*C + c, w*C + c] = weights[dy*ksize + dx, c]
    mats = []
    for dy in range(ksize):
        t = jnp.zeros((W * C, W * C), jnp.float32)
        for dx in range(ksize):
            ox = dx * dil - pad
            s = jnp.eye(W, k=-ox, dtype=jnp.float32)          # s[w+ox, w] = 1 if in range
            t = t + jnp.kron(s, jnp.diag(weights[dy * ksize + dx]))
        mats.append(t)
    return jnp.stack(mats).reshape(ksize * W * C, W * C)       # (k*WC, WC)


def build_operands(params, W, C):
    WC = W * C
    ops = {}
    ops['t0'] = _col_tap_mats(params['w0'], W, C, D_K, 1, D_P).astype(jnp.bfloat16)
    ops['b0'] = jnp.tile(params['b0'], (1, W))                                 # (1, WC) f32
    ops['ts'] = _col_tap_mats(params['ws'], W, C, DD_K, DILATION, DD_P).astype(jnp.bfloat16)
    ops['bs'] = jnp.tile(params['bs'], (1, W))                                 # (1, WC) f32
    ops['w1'] = jnp.kron(jnp.eye(W, dtype=jnp.float32),
                         params['w1']).astype(jnp.bfloat16)                    # (WC, WC) bf16
    ops['b1'] = jnp.tile(params['b1'], (1, W))                                 # (1, WC) f32
    # SE weights: tiled over W, padded to one sublane tile (8 rows), f32 (VPU path)
    ops['fc1t'] = jnp.zeros((SE_ROWS, WC), jnp.float32).at[:HIDDEN, :].set(
        jnp.tile(params['fc1'].T, (1, W)))                                     # (8, WC)
    ops['fc2t'] = jnp.zeros((SE_ROWS, WC), jnp.float32).at[:HIDDEN, :].set(
        jnp.tile(params['fc2'], (1, W)))                                       # (8, WC)
    return ops


def dual_attention(x_nchw, params):
    """Top-level wrapper: accepts/returns NCHW like the PyTorch module."""
    B, C, H, W = x_nchw.shape
    WC = W * C
    assert WC == 128, "lane-dense design requires W * C == 128"
    # images per grid block: whole images only, aim for up to 256 MXU rows per step
    img_per_block = 1
    for d in range(1, B + 1):
        if B % d == 0 and d * H <= 256 and ((d * H) % 8 == 0 or d == B):
            img_per_block = d
    TILE_BH = img_per_block * H
    NBLK = B // img_per_block

    # NCHW -> lane-dense (B*H, W*C).  (At production scale keep activations in this
    # layout between layers to avoid the extra HBM round trip; interface is NCHW by spec.)
    x2 = jnp.transpose(x_nchw, (0, 2, 3, 1)).reshape(B * H, WC)
    ops = build_operands(params, W, C)

    def const(shape):
        return pl.BlockSpec(shape, lambda i: (0, 0))

    kernel = pl.pallas_call(
        make_dau_kernel(img_per_block, H, W, C),
        out_shape=jax.ShapeDtypeStruct((B * H, WC), jnp.float32),
        grid_spec=pltpu.PrefetchScalarGridSpec(
            num_scalar_prefetch=0,
            grid=(NBLK,),                                   # blocks of whole images
            in_specs=[
                pl.BlockSpec((TILE_BH, WC), lambda i: (i, 0)),   # x (tiled over blocks)
                const((D_K * WC, WC)),                           # conv0 vstacked taps (bf16)
                const((1, WC)),                                  # conv0 bias
                const((DD_K * WC, WC)),                          # conv_spatial taps (bf16)
                const((1, WC)),                                  # conv_spatial bias
                const((WC, WC)),                                 # conv1 block-diag (bf16)
                const((1, WC)),                                  # conv1 bias
                const((SE_ROWS, WC)),                            # fc1 (tiled, transposed)
                const((SE_ROWS, WC)),                            # fc2 (tiled)
            ],
            out_specs=pl.BlockSpec((TILE_BH, WC), lambda i: (i, 0)),
            scratch_shapes=[pltpu.VMEM((TILE_BH, KMAX * WC), jnp.bfloat16)],
        ),
        compiler_params=pltpu.CompilerParams(
            dimension_semantics=("parallel",)),
    )
    out2 = kernel(x2, ops['t0'], ops['b0'], ops['ts'], ops['bs'],
                  ops['w1'], ops['b1'], ops['fc1t'], ops['fc2t'])
    return jnp.transpose(out2.reshape(B, H, W, C), (0, 3, 1, 2))


# ---- pure-JAX reference (independent check) ---------------------------------
def reference_nhwc(x, p):
    C = x.shape[-1]
    dn = ('NHWC', 'HWIO', 'NHWC')
    hi = lax.Precision.HIGHEST
    w0 = p['w0'].reshape(D_K, D_K, 1, C)
    a = lax.conv_general_dilated(x, w0, (1, 1), [(D_P, D_P), (D_P, D_P)],
                                 dimension_numbers=dn, feature_group_count=C,
                                 precision=hi) + p['b0']
    ws = p['ws'].reshape(DD_K, DD_K, 1, C)
    a = lax.conv_general_dilated(a, ws, (1, 1), [(DD_P, DD_P), (DD_P, DD_P)],
                                 rhs_dilation=(DILATION, DILATION),
                                 dimension_numbers=dn, feature_group_count=C,
                                 precision=hi) + p['bs']
    f = jnp.einsum('bhwc,cd->bhwd', a, p['w1'], precision=hi) + p['b1']
    m = jnp.mean(x, axis=(1, 2))
    h = jnp.maximum(jnp.dot(m, p['fc1'], precision=hi), 0.0)
    s = jax.nn.sigmoid(jnp.dot(h, p['fc2'], precision=hi))
    return s[:, None, None, :] * f * x


def init_params(key):
    ks = jax.random.split(key, 8)
    return {
        'w0':  jax.random.normal(ks[0], (D_K * D_K, DIM), jnp.float32) * 0.1,
        'b0':  jax.random.normal(ks[1], (1, DIM), jnp.float32) * 0.1,
        'ws':  jax.random.normal(ks[2], (DD_K * DD_K, DIM), jnp.float32) * 0.1,
        'bs':  jax.random.normal(ks[3], (1, DIM), jnp.float32) * 0.1,
        'w1':  jax.random.normal(ks[4], (DIM, DIM), jnp.float32) * 0.1,
        'b1':  jax.random.normal(ks[5], (1, DIM), jnp.float32) * 0.1,
        'fc1': jax.random.normal(ks[6], (DIM, HIDDEN), jnp.float32) * 0.1,
        'fc2': jax.random.normal(ks[7], (HIDDEN, DIM), jnp.float32) * 0.1,
    }


if __name__ == "__main__":
    key = jax.random.PRNGKey(0)
    kx, kp = jax.random.split(key)
    B, H, W = 2, 16, 16
    x_nchw = jax.random.normal(kx, (B, DIM, H, W), jnp.float32)
    params = init_params(kp)

    out = dual_attention(x_nchw, params)
    out = jax.block_until_ready(out)

    # sanity check against an independent pure-JAX reference (bf16 MXU operands -> 2e-2 tol)
    ref = reference_nhwc(jnp.transpose(x_nchw, (0, 2, 3, 1)), params)
    ref = jnp.transpose(ref, (0, 3, 1, 2))
    assert out.shape == x_nchw.shape
    assert jnp.allclose(out, ref, atol=2e-2, rtol=2e-2), "mismatch vs reference"

    print("KERNEL_OK")
</pallas_src>

<mosaic_0001>
module attributes {stable_mosaic.version = 11 : i64} {
  func.func @kernel(%arg0: i32, %arg1: memref<32x128xf32, #tpu.memory_space<vmem>>, %arg2: memref<640x128xbf16, #tpu.memory_space<vmem>>, %arg3: memref<1x128xf32, #tpu.memory_space<vmem>>, %arg4: memref<640x128xbf16, #tpu.memory_space<vmem>>, %arg5: memref<1x128xf32, #tpu.memory_space<vmem>>, %arg6: memref<128x128xbf16, #tpu.memory_space<vmem>>, %arg7: memref<1x128xf32, #tpu.memory_space<vmem>>, %arg8: memref<8x128xf32, #tpu.memory_space<vmem>>, %arg9: memref<8x128xf32, #tpu.memory_space<vmem>>, %arg10: memref<32x128xf32, #tpu.memory_space<vmem>>, %arg11: memref<32x640xbf16, #tpu.memory_space<vmem>>) attributes {dimension_semantics = [#tpu.dimension_semantics<parallel>], iteration_bounds = array<i64: 1>, scalar_prefetch = 0 : i64, scratch_operands = 1 : i64, tpu.core_type = #tpu.core_type<tc>, window_params = [{transform_indices = @transform_0, window_bounds = array<i64: 32, 128>}, {pipeline_mode = #tpu.pipeline_mode<synchronous>, transform_indices = @transform_1, window_bounds = array<i64: 640, 128>}, {pipeline_mode = #tpu.pipeline_mode<synchronous>, transform_indices = @transform_2, window_bounds = array<i64: 1, 128>}, {pipeline_mode = #tpu.pipeline_mode<synchronous>, transform_indices = @transform_3, window_bounds = array<i64: 640, 128>}, {pipeline_mode = #tpu.pipeline_mode<synchronous>, transform_indices = @transform_4, window_bounds = array<i64: 1, 128>}, {pipeline_mode = #tpu.pipeline_mode<synchronous>, transform_indices = @transform_5, window_bounds = array<i64: 128, 128>}, {pipeline_mode = #tpu.pipeline_mode<synchronous>, transform_indices = @transform_6, window_bounds = array<i64: 1, 128>}, {pipeline_mode = #tpu.pipeline_mode<synchronous>, transform_indices = @transform_7, window_bounds = array<i64: 8, 128>}, {pipeline_mode = #tpu.pipeline_mode<synchronous>, transform_indices = @transform_8, window_bounds = array<i64: 8, 128>}, {transform_indices = @transform_9, window_bounds = array<i64: 32, 128>}]} {
    %c0 = arith.constant 0 : index
    %c0_0 = arith.constant 0 : index
    %0 = vector.load %arg1[%c0, %c0_0] : memref<32x128xf32, #tpu.memory_space<vmem>>, vector<32x128xf32>
    %1 = tpu.iota {dimensions = array<i32: 0>} : vector<32x128xi32>
    %c16_i32 = arith.constant 16 : i32
    %c0_i32 = arith.constant 0 : i32
    %2 = arith.cmpi eq, %c16_i32, %c0_i32 : i32
    %c1_i32 = arith.constant 1 : i32
    %3 = arith.select %2, %c1_i32, %c16_i32 : i32
    %4 = vector.broadcast %3 : i32 to vector<32x128xi32>
    %5 = arith.remsi %1, %4 : vector<32x128xi32>
    %c0_i32_1 = arith.constant 0 : i32
    %6 = vector.broadcast %c0_i32_1 : i32 to vector<32x128xi32>
    %7 = arith.cmpi ne, %5, %6 : vector<32x128xi32>
    %c0_i32_2 = arith.constant 0 : i32
    %8 = vector.broadcast %c0_i32_2 : i32 to vector<32x128xi32>
    %9 = arith.cmpi slt, %5, %8 : vector<32x128xi32>
    %c0_i32_3 = arith.constant 0 : i32
    %10 = arith.cmpi slt, %3, %c0_i32_3 : i32
    %11 = vector.broadcast %10 : i1 to vector<32x128xi1>
    %12 = vector.broadcast %11 : vector<32x128xi1> to vector<32x128xi1>
    %13 = arith.xori %9, %12 : vector<32x128xi1>
    %14 = arith.andi %13, %7 : vector<32x128xi1>
    %15 = vector.broadcast %3 : i32 to vector<32x128xi32>
    %16 = arith.addi %5, %15 : vector<32x128xi32>
    %17 = arith.select %14, %16, %5 : vector<32x128xi1>, vector<32x128xi32>
    %c2_i32 = arith.constant 2 : i32
    %18 = tpu.dynamic_rotate %0 by %c2_i32 dim 0 : vector<32x128xf32>, i32 -> vector<32x128xf32>
    %c2_i32_4 = arith.constant 2 : i32
    %19 = vector.broadcast %c2_i32_4 : i32 to vector<32x128xi32>
    %20 = arith.cmpi sge, %17, %19 : vector<32x128xi32>
    %c18_i32 = arith.constant 18 : i32
    %21 = vector.broadcast %c18_i32 : i32 to vector<32x128xi32>
    %22 = arith.cmpi slt, %17, %21 : vector<32x128xi32>
    %23 = arith.andi %20, %22 : vector<32x128xi1>
    %cst = arith.constant 0.000000e+00 : f32
    %24 = vector.broadcast %cst : f32 to vector<32x128xf32>
    %25 = arith.select %23, %18, %24 : vector<32x128xi1>, vector<32x128xf32>
    %26 = arith.truncf %25 : vector<32x128xf32> to vector<32x128xbf16>
    %c0_5 = arith.constant 0 : index
    %c0_6 = arith.constant 0 : index
    %27 = vector.load %arg11[%c0_5, %c0_6] : memref<32x640xbf16, #tpu.memory_space<vmem>>, vector<32x128xbf16>
    tpu.vector_store %arg11[%c0_5, %c0_6], %26 {strides = array<i32>} : memref<32x640xbf16, #tpu.memory_space<vmem>>, vector<32x128xbf16>,
    %c1_i32_7 = arith.constant 1 : i32
    %28 = tpu.dynamic_rotate %0 by %c1_i32_7 dim 0 : vector<32x128xf32>, i32 -> vector<32x128xf32>
    %c1_i32_8 = arith.constant 1 : i32
    %29 = vector.broadcast %c1_i32_8 : i32 to vector<32x128xi32>
    %30 = arith.cmpi sge, %17, %29 : vector<32x128xi32>
    %c17_i32 = arith.constant 17 : i32
    %31 = vector.broadcast %c17_i32 : i32 to vector<32x128xi32>
    %32 = arith.cmpi slt, %17, %31 : vector<32x128xi32>
    %33 = arith.andi %30, %32 : vector<32x128xi1>
    %cst_9 = arith.constant 0.000000e+00 : f32
    %34 = vector.broadcast %cst_9 : f32 to vector<32x128xf32>
    %35 = arith.select %33, %28, %34 : vector<32x128xi1>, vector<32x128xf32>
    %36 = arith.truncf %35 : vector<32x128xf32> to vector<32x128xbf16>
    %c0_10 = arith.constant 0 : index
    %c128 = arith.constant 128 : index
    %37 = vector.load %arg11[%c0_10, %c128] : memref<32x640xbf16, #tpu.memory_space<vmem>>, vector<32x128xbf16>
    tpu.vector_store %arg11[%c0_10, %c128], %36 {strides = array<i32>} : memref<32x640xbf16, #tpu.memory_space<vmem>>, vector<32x128xbf16>,
    %38 = arith.truncf %0 : vector<32x128xf32> to vector<32x128xbf16>
    %c0_11 = arith.constant 0 : index
    %c256 = arith.constant 256 : index
    %39 = vector.load %arg11[%c0_11, %c256] : memref<32x640xbf16, #tpu.memory_space<vmem>>, vector<32x128xbf16>
    tpu.vector_store %arg11[%c0_11, %c256], %38 {strides = array<i32>} : memref<32x640xbf16, #tpu.memory_space<vmem>>, vector<32x128xbf16>,
    %c31_i32 = arith.constant 31 : i32
    %40 = tpu.dynamic_rotate %0 by %c31_i32 dim 0 : vector<32x128xf32>, i32 -> vector<32x128xf32>
    %c-1_i32 = arith.constant -1 : i32
    %41 = vector.broadcast %c-1_i32 : i32 to vector<32x128xi32>
    %42 = arith.cmpi sge, %17, %41 : vector<32x128xi32>
    %c15_i32 = arith.constant 15 : i32
    %43 = vector.broadcast %c15_i32 : i32 to vector<32x128xi32>
    %44 = arith.cmpi slt, %17, %43 : vector<32x128xi32>
    %45 = arith.andi %42, %44 : vector<32x128xi1>
    %cst_12 = arith.constant 0.000000e+00 : f32
    %46 = vector.broadcast %cst_12 : f32 to vector<32x128xf32>
    %47 = arith.select %45, %40, %46 : vector<32x128xi1>, vector<32x128xf32>
    %48 = arith.truncf %47 : vector<32x128xf32> to vector<32x128xbf16>
    %c0_13 = arith.constant 0 : index
    %c384 = arith.constant 384 : index
    %49 = vector.load %arg11[%c0_13, %c384] : memref<32x640xbf16, #tpu.memory_space<vmem>>, vector<32x128xbf16>
    tpu.vector_store %arg11[%c0_13, %c384], %48 {strides = array<i32>} : memref<32x640xbf16, #tpu.memory_space<vmem>>, vector<32x128xbf16>,
    %c30_i32 = arith.constant 30 : i32
    %50 = tpu.dynamic_rotate %0 by %c30_i32 dim 0 : vector<32x128xf32>, i32 -> vector<32x128xf32>
    %c-2_i32 = arith.constant -2 : i32
    %51 = vector.broadcast %c-2_i32 : i32 to vector<32x128xi32>
    %52 = arith.cmpi sge, %17, %51 : vector<32x128xi32>
    %c14_i32 = arith.constant 14 : i32
    %53 = vector.broadcast %c14_i32 : i32 to vector<32x128xi32>
    %54 = arith.cmpi slt, %17, %53 : vector<32x128xi32>
    %55 = arith.andi %52, %54 : vector<32x128xi1>
    %cst_14 = arith.constant 0.000000e+00 : f32
    %56 = vector.broadcast %cst_14 : f32 to vector<32x128xf32>
    %57 = arith.select %55, %50, %56 : vector<32x128xi1>, vector<32x128xf32>
    %58 = arith.truncf %57 : vector<32x128xf32> to vector<32x128xbf16>
    %c0_15 = arith.constant 0 : index
    %c512 = arith.constant 512 : index
    %59 = vector.load %arg11[%c0_15, %c512] : memref<32x640xbf16, #tpu.memory_space<vmem>>, vector<32x128xbf16>
    tpu.vector_store %arg11[%c0_15, %c512], %58 {strides = array<i32>} : memref<32x640xbf16, #tpu.memory_space<vmem>>, vector<32x128xbf16>,
    %c0_16 = arith.constant 0 : index
    %c0_17 = arith.constant 0 : index
    %60 = vector.load %arg11[%c0_16, %c0_17] : memref<32x640xbf16, #tpu.memory_space<vmem>>, vector<32x640xbf16>
    %c0_18 = arith.constant 0 : index
    %c0_19 = arith.constant 0 : index
    %61 = vector.load %arg2[%c0_18, %c0_19] : memref<640x128xbf16, #tpu.memory_space<vmem>>, vector<640x128xbf16>
    %cst_20 = arith.constant dense<0.000000e+00> : vector<32x128xf32>
    %62 = tpu.matmul %60, %61, %cst_20 {dimension_numbers = #tpu.dot_dimension_numbers<[1], [0], [0], [1], [0, 0, 1, 1], [], []>} : vector<32x640xbf16>, vector<640x128xbf16>, vector<32x128xf32> -> vector<32x128xf32>
    %c0_21 = arith.constant 0 : index
    %c0_22 = arith.constant 0 : index
    %63 = vector.load %arg3[%c0_21, %c0_22] : memref<1x128xf32, #tpu.memory_space<vmem>>, vector<1x128xf32>
    %64 = vector.broadcast %63 : vector<1x128xf32> to vector<32x128xf32>
    %65 = arith.addf %62, %64 : vector<32x128xf32>
    %c6_i32 = arith.constant 6 : i32
    %66 = tpu.dynamic_rotate %65 by %c6_i32 dim 0 : vector<32x128xf32>, i32 -> vector<32x128xf32>
    %c6_i32_23 = arith.constant 6 : i32
    %67 = vector.broadcast %c6_i32_23 : i32 to vector<32x128xi32>
    %68 = arith.cmpi sge, %17, %67 : vector<32x128xi32>
    %c22_i32 = arith.constant 22 : i32
    %69 = vector.broadcast %c22_i32 : i32 to vector<32x128xi32>
    %70 = arith.cmpi slt, %17, %69 : vector<32x128xi32>
    %71 = arith.andi %68, %70 : vector<32x128xi1>
    %cst_24 = arith.constant 0.000000e+00 : f32
    %72 = vector.broadcast %cst_24 : f32 to vector<32x128xf32>
    %73 = arith.select %71, %66, %72 : vector<32x128xi1>, vector<32x128xf32>
    %74 = arith.truncf %73 : vector<32x128xf32> to vector<32x128xbf16>
    %c0_25 = arith.constant 0 : index
    %c0_26 = arith.constant 0 : index
    %75 = vector.load %arg11[%c0_25, %c0_26] : memref<32x640xbf16, #tpu.memory_space<vmem>>, vector<32x128xbf16>
    tpu.vector_store %arg11[%c0_25, %c0_26], %74 {strides = array<i32>} : memref<32x640xbf16, #tpu.memory_space<vmem>>, vector<32x128xbf16>,
    %c3_i32 = arith.constant 3 : i32
    %76 = tpu.dynamic_rotate %65 by %c3_i32 dim 0 : vector<32x128xf32>, i32 -> vector<32x128xf32>
    %c3_i32_27 = arith.constant 3 : i32
    %77 = vector.broadcast %c3_i32_27 : i32 to vector<32x128xi32>
    %78 = arith.cmpi sge, %17, %77 : vector<32x128xi32>
    %c19_i32 = arith.constant 19 : i32
    %79 = vector.broadcast %c19_i32 : i32 to vector<32x128xi32>
    %80 = arith.cmpi slt, %17, %79 : vector<32x128xi32>
    %81 = arith.andi %78, %80 : vector<32x128xi1>
    %cst_28 = arith.constant 0.000000e+00 : f32
    %82 = vector.broadcast %cst_28 : f32 to vector<32x128xf32>
    %83 = arith.select %81, %76, %82 : vector<32x128xi1>, vector<32x128xf32>
    %84 = arith.truncf %83 : vector<32x128xf32> to vector<32x128xbf16>
    %c0_29 = arith.constant 0 : index
    %c128_30 = arith.constant 128 : index
    %85 = vector.load %arg11[%c0_29, %c128_30] : memref<32x640xbf16, #tpu.memory_space<vmem>>, vector<32x128xbf16>
    tpu.vector_store %arg11[%c0_29, %c128_30], %84 {strides = array<i32>} : memref<32x640xbf16, #tpu.memory_space<vmem>>, vector<32x128xbf16>,
    %86 = arith.truncf %65 : vector<32x128xf32> to vector<32x128xbf16>
    %c0_31 = arith.constant 0 : index
    %c256_32 = arith.constant 256 : index
    %87 = vector.load %arg11[%c0_31, %c256_32] : memref<32x640xbf16, #tpu.memory_space<vmem>>, vector<32x128xbf16>
    tpu.vector_store %arg11[%c0_31, %c256_32], %86 {strides = array<i32>} : memref<32x640xbf16, #tpu.memory_space<vmem>>, vector<32x128xbf16>,
    %c29_i32 = arith.constant 29 : i32
    %88 = tpu.dynamic_rotate %65 by %c29_i32 dim 0 : vector<32x128xf32>, i32 -> vector<32x128xf32>
    %c-3_i32 = arith.constant -3 : i32
    %89 = vector.broadcast %c-3_i32 : i32 to vector<32x128xi32>
    %90 = arith.cmpi sge, %17, %89 : vector<32x128xi32>
    %c13_i32 = arith.constant 13 : i32
    %91 = vector.broadcast %c13_i32 : i32 to vector<32x128xi32>
    %92 = arith.cmpi slt, %17, %91 : vector<32x128xi32>
    %93 = arith.andi %90, %92 : vector<32x128xi1>
    %cst_33 = arith.constant 0.000000e+00 : f32
    %94 = vector.broadcast %cst_33 : f32 to vector<32x128xf32>
    %95 = arith.select %93, %88, %94 : vector<32x128xi1>, vector<32x128xf32>
    %96 = arith.truncf %95 : vector<32x128xf32> to vector<32x128xbf16>
    %c0_34 = arith.constant 0 : index
    %c384_35 = arith.constant 384 : index
    %97 = vector.load %arg11[%c0_34, %c384_35] : memref<32x640xbf16, #tpu.memory_space<vmem>>, vector<32x128xbf16>
    tpu.vector_store %arg11[%c0_34, %c384_35], %96 {strides = array<i32>} : memref<32x640xbf16, #tpu.memory_space<vmem>>, vector<32x128xbf16>,
    %c26_i32 = arith.constant 26 : i32
    %98 = tpu.dynamic_rotate %65 by %c26_i32 dim 0 : vector<32x128xf32>, i32 -> vector<32x128xf32>
    %c-6_i32 = arith.constant -6 : i32
    %99 = vector.broadcast %c-6_i32 : i32 to vector<32x128xi32>
    %100 = arith.cmpi sge, %17, %99 : vector<32x128xi32>
    %c10_i32 = arith.constant 10 : i32
    %101 = vector.broadcast %c10_i32 : i32 to vector<32x128xi32>
    %102 = arith.cmpi slt, %17, %101 : vector<32x128xi32>
    %103 = arith.andi %100, %102 : vector<32x128xi1>
    %cst_36 = arith.constant 0.000000e+00 : f32
    %104 = vector.broadcast %cst_36 : f32 to vector<32x128xf32>
    %105 = arith.select %103, %98, %104 : vector<32x128xi1>, vector<32x128xf32>
    %106 = arith.truncf %105 : vector<32x128xf32> to vector<32x128xbf16>
    %c0_37 = arith.constant 0 : index
    %c512_38 = arith.constant 512 : index
    %107 = vector.load %arg11[%c0_37, %c512_38] : memref<32x640xbf16, #tpu.memory_space<vmem>>, vector<32x128xbf16>
    tpu.vector_store %arg11[%c0_37, %c512_38], %106 {strides = array<i32>} : memref<32x640xbf16, #tpu.memory_space<vmem>>, vector<32x128xbf16>,
    %c0_39 = arith.constant 0 : index
    %c0_40 = arith.constant 0 : index
    %108 = vector.load %arg11[%c0_39, %c0_40] : memref<32x640xbf16, #tpu.memory_space<vmem>>, vector<32x640xbf16>
    %c0_41 = arith.constant 0 : index
    %c0_42 = arith.constant 0 : index
    %109 = vector.load %arg4[%c0_41, %c0_42] : memref<640x128xbf16, #tpu.memory_space<vmem>>, vector<640x128xbf16>
    %cst_43 = arith.constant dense<0.000000e+00> : vector<32x128xf32>
    %110 = tpu.matmul %108, %109, %cst_43 {dimension_numbers = #tpu.dot_dimension_numbers<[1], [0], [0], [1], [0, 0, 1, 1], [], []>} : vector<32x640xbf16>, vector<640x128xbf16>, vector<32x128xf32> -> vector<32x128xf32>
    %c0_44 = arith.constant 0 : index
    %c0_45 = arith.constant 0 : index
    %111 = vector.load %arg5[%c0_44, %c0_45] : memref<1x128xf32, #tpu.memory_space<vmem>>, vector<1x128xf32>
    %112 = vector.broadcast %111 : vector<1x128xf32> to vector<32x128xf32>
    %113 = arith.addf %110, %112 : vector<32x128xf32>
    %114 = arith.truncf %113 : vector<32x128xf32> to vector<32x128xbf16>
    %c0_46 = arith.constant 0 : index
    %c0_47 = arith.constant 0 : index
    %115 = vector.load %arg6[%c0_46, %c0_47] : memref<128x128xbf16, #tpu.memory_space<vmem>>, vector<128x128xbf16>
    %cst_48 = arith.constant dense<0.000000e+00> : vector<32x128xf32>
    %116 = tpu.matmul %114, %115, %cst_48 {dimension_numbers = #tpu.dot_dimension_numbers<[1], [0], [0], [1], [0, 0, 1, 1], [], []>} : vector<32x128xbf16>, vector<128x128xbf16>, vector<32x128xf32> -> vector<32x128xf32>
    %c0_49 = arith.constant 0 : index
    %c0_50 = arith.constant 0 : index
    %117 = vector.load %arg7[%c0_49, %c0_50] : memref<1x128xf32, #tpu.memory_space<vmem>>, vector<1x128xf32>
    %118 = vector.broadcast %117 : vector<1x128xf32> to vector<32x128xf32>
    %119 = arith.addf %116, %118 : vector<32x128xf32>
    %120 = vector.shape_cast %0 : vector<32x128xf32> to vector<2x16x128xf32>
    %cst_51 = arith.constant dense<0.000000e+00> : vector<2x128xf32>
    %121 = vector.multi_reduction <add>, %120, %cst_51 [1] : vector<2x16x128xf32> to vector<2x128xf32>
    %cst_52 = arith.constant 3.906250e-03 : f32
    %122 = vector.broadcast %cst_52 : f32 to vector<2x128xf32>
    %123 = arith.mulf %121, %122 : vector<2x128xf32>
    %cst_53 = arith.constant 0.000000e+00 : f32
    %124 = vector.broadcast %cst_53 : f32 to vector<2x128xf32>
    %c0_54 = arith.constant 0 : index
    %c0_55 = arith.constant 0 : index
    %125 = vector.load %arg8[%c0_54, %c0_55] : memref<8x128xf32, #tpu.memory_space<vmem>>, vector<1x128xf32>
    %126 = vector.broadcast %125 : vector<1x128xf32> to vector<2x128xf32>
    %127 = arith.mulf %123, %126 : vector<2x128xf32>
    %cst_56 = arith.constant dense<0.000000e+00> : vector<2xf32>
    %128 = vector.multi_reduction <add>, %127, %cst_56 [1] : vector<2x128xf32> to vector<2xf32>
    %129 = vector.shape_cast %128 : vector<2xf32> to vector<2x1xf32>
    %cst_57 = arith.constant 0.000000e+00 : f32
    %130 = vector.broadcast %cst_57 : f32 to vector<2x1xf32>
    %131 = arith.maximumf %129, %130 : vector<2x1xf32>
    %c0_58 = arith.constant 0 : index
    %c0_59 = arith.constant 0 : index
    %132 = vector.load %arg9[%c0_58, %c0_59] : memref<8x128xf32, #tpu.memory_space<vmem>>, vector<1x128xf32>
    %133 = vector.broadcast %131 : vector<2x1xf32> to vector<2x128xf32>
    %134 = vector.broadcast %132 : vector<1x128xf32> to vector<2x128xf32>
    %135 = arith.mulf %133, %134 : vector<2x128xf32>
    %136 = arith.addf %124, %135 : vector<2x128xf32>
    %c1 = arith.constant 1 : index
    %c0_60 = arith.constant 0 : index
    %137 = vector.load %arg8[%c1, %c0_60] : memref<8x128xf32, #tpu.memory_space<vmem>>, vector<1x128xf32>
    %138 = vector.broadcast %137 : vector<1x128xf32> to vector<2x128xf32>
    %139 = arith.mulf %123, %138 : vector<2x128xf32>
    %cst_61 = arith.constant dense<0.000000e+00> : vector<2xf32>
    %140 = vector.multi_reduction <add>, %139, %cst_61 [1] : vector<2x128xf32> to vector<2xf32>
    %141 = vector.shape_cast %140 : vector<2xf32> to vector<2x1xf32>
    %cst_62 = arith.constant 0.000000e+00 : f32
    %142 = vector.broadcast %cst_62 : f32 to vector<2x1xf32>
    %143 = arith.maximumf %141, %142 : vector<2x1xf32>
    %c1_63 = arith.constant 1 : index
    %c0_64 = arith.constant 0 : index
    %144 = vector.load %arg9[%c1_63, %c0_64] : memref<8x128xf32, #tpu.memory_space<vmem>>, vector<1x128xf32>
    %145 = vector.broadcast %143 : vector<2x1xf32> to vector<2x128xf32>
    %146 = vector.broadcast %144 : vector<1x128xf32> to vector<2x128xf32>
    %147 = arith.mulf %145, %146 : vector<2x128xf32>
    %148 = arith.addf %136, %147 : vector<2x128xf32>
    %cst_65 = arith.constant 0.000000e+00 : f32
    %149 = vector.broadcast %cst_65 : f32 to vector<2x128xf32>
    %150 = arith.subf %149, %148 : vector<2x128xf32>
    %151 = math.exp %150 : vector<2x128xf32>
    %cst_66 = arith.constant 1.000000e+00 : f32
    %152 = vector.broadcast %cst_66 : f32 to vector<2x128xf32>
    %153 = arith.addf %152, %151 : vector<2x128xf32>
    %154 = tpu.reciprocal %153 {approx = true} : vector<2x128xf32> -> vector<2x128xf32>
    %155 = vector.shape_cast %154 : vector<2x128xf32> to vector<2x1x128xf32>
    %156 = vector.shape_cast %155 : vector<2x1x128xf32> to vector<2x1x128xf32>
    %157 = vector.broadcast %156 : vector<2x1x128xf32> to vector<2x16x128xf32>
    %158 = vector.shape_cast %157 : vector<2x16x128xf32> to vector<32x128xf32>
    %159 = arith.mulf %158, %119 : vector<32x128xf32>
    %160 = arith.mulf %159, %0 : vector<32x128xf32>
    %c0_67 = arith.constant 0 : index
    %c0_68 = arith.constant 0 : index
    %161 = vector.load %arg10[%c0_67, %c0_68] : memref<32x128xf32, #tpu.memory_space<vmem>>, vector<32x128xf32>
    tpu.vector_store %arg10[%c0_67, %c0_68], %160 {strides = array<i32>} : memref<32x128xf32, #tpu.memory_space<vmem>>, vector<32x128xf32>,
    return
  }
  func.func @transform_0(%arg0: i32) -> (i32, i32) {
    %c0_i32 = arith.constant 0 : i32
    %c0_i32_0 = arith.constant 0 : i32
    return %arg0, %c0_i32 : i32, i32
  }
  func.func @transform_1(%arg0: i32) -> (i32, i32) {
    %c0_i32 = arith.constant 0 : i32
    %c0_i32_0 = arith.constant 0 : i32
    %c0_i32_1 = arith.constant 0 : i32
    return %c0_i32, %c0_i32_0 : i32, i32
  }
  func.func @transform_2(%arg0: i32) -> (i32, i32) {
    %c0_i32 = arith.constant 0 : i32
    %c0_i32_0 = arith.constant 0 : i32
    %c0_i32_1 = arith.constant 0 : i32
    return %c0_i32, %c0_i32_0 : i32, i32
  }
  func.func @transform_3(%arg0: i32) -> (i32, i32) {
    %c0_i32 = arith.constant 0 : i32
    %c0_i32_0 = arith.constant 0 : i32
    %c0_i32_1 = arith.constant 0 : i32
    return %c0_i32, %c0_i32_0 : i32, i32
  }
  func.func @transform_4(%arg0: i32) -> (i32, i32) {
    %c0_i32 = arith.constant 0 : i32
    %c0_i32_0 = arith.constant 0 : i32
    %c0_i32_1 = arith.constant 0 : i32
    return %c0_i32, %c0_i32_0 : i32, i32
  }
  func.func @transform_5(%arg0: i32) -> (i32, i32) {
    %c0_i32 = arith.constant 0 : i32
    %c0_i32_0 = arith.constant 0 : i32
    %c0_i32_1 = arith.constant 0 : i32
    return %c0_i32, %c0_i32_0 : i32, i32
  }
  func.func @transform_6(%arg0: i32) -> (i32, i32) {
    %c0_i32 = arith.constant 0 : i32
    %c0_i32_0 = arith.constant 0 : i32
    %c0_i32_1 = arith.constant 0 : i32
    return %c0_i32, %c0_i32_0 : i32, i32
  }
  func.func @transform_7(%arg0: i32) -> (i32, i32) {
    %c0_i32 = arith.constant 0 : i32
    %c0_i32_0 = arith.constant 0 : i32
    %c0_i32_1 = arith.constant 0 : i32
    return %c0_i32, %c0_i32_0 : i32, i32
  }
  func.func @transform_8(%arg0: i32) -> (i32, i32) {
    %c0_i32 = arith.constant 0 : i32
    %c0_i32_0 = arith.constant 0 : i32
    %c0_i32_1 = arith.constant 0 : i32
    return %c0_i32, %c0_i32_0 : i32, i32
  }
  func.func @transform_9(%arg0: i32) -> (i32, i32) {
    %c0_i32 = arith.constant 0 : i32
    %c0_i32_0 = arith.constant 0 : i32
    return %arg0, %c0_i32 : i32, i32
  }
}

</mosaic_0001>

<bundles_post_ra>
// kernel: tpu_custom_call.1
= control target key start
LH: loop header
LB: loop body
LE: loop exit
PB: predicated region body
PF: predicated region fallthrough
CT: control target
= control target key end

     0   :  { %14 = vsyncpa [#allocation4], 0  ;;  %s2568_s0 = inlined_call_operand.hbm [shape: f32[32,128], index: 0, kind: input, shape index: {}]   ;;  %s2569_s1 = inlined_call_operand.hbm [shape: bf16[640,128], index: 1, kind: input, shape index: {}]   ;;  %s2570_s2 = inlined_call_operand.vmem [shape: f32[1,128], index: 2, kind: input, shape index: {}]   ;;  %s2571_s3 = inlined_call_operand.hbm [shape: bf16[640,128], index: 3, kind: input, shape index: {}]   ;;  %s2572_s4 = inlined_call_operand.vmem [shape: f32[1,128], index: 4, kind: input, shape index: {}]   ;;  %s2573_s5 = inlined_call_operand.hbm [shape: bf16[128,128], index: 5, kind: input, shape index: {}]   ;;  %s2574_s6 = inlined_call_operand.vmem [shape: f32[1,128], index: 6, kind: input, shape index: {}]   ;;  %s2575_s7 = inlined_call_operand.vmem [shape: f32[8,128], index: 7, kind: input, shape index: {}]   ;;  %s2576_s8 = inlined_call_operand.vmem [shape: f32[8,128], index: 8, kind: input, shape index: {}]   ;;  %s2577_s9 = inlined_call_operand.hbm [shape: f32[32,128], index: 9, kind: output, shape index: {}]  }
   0x1   :  { %15 = vsyncpa [#allocation7], 0 }
   0x2   :  { %16 = vsyncpa [#allocation10], 0 }
   0x3   :  { %17 = vsyncpa [#allocation5], 0  ;;  %s2177_s30 = smov [#allocation6]   ;;  %s2059_s13 = scalar_lea.hbm %s2569_s1, 5120 }
   0x4   :  { %s35_s10 = sshll.u32 %s2177_s30, 4  ;;  %p2060_p0 = scmp.ne.s32.totalorder %s2569_s1, %s2059_s13  ;;  %s36_s10 = int_to_ptr.vmem [resolvable:$true] %s35_s10 }
   0x5   :  { %p2063_p1 = scmp.lt.u32.totalorder %s2059_s13, %s2569_s1 }
   0x7   :  { %p2065_p2 = pnand %p2063_p1, %p2060_p0 }
   0x9   :  { %2068 = shalt.err (!%p2065_p2)
}
   0xa   :  { %s2069_s18 = scalar_lea.vmem %s36_s10, 5120  ;;  %p2074_p4 = scmp.lt.s32.totalorder %s36_s10, %s36_s10 }
   0xb   :  { %p2070_p3 = scmp.ne.s32.totalorder %s36_s10, %s2069_s18  ;;  %p2075_p5 = scmp.lt.s32.totalorder %s2069_s18, %s2069_s18 }
   0xd   :  { %p2076_p6 = por %p2075_p5, %p2074_p4 }
   0xf   :  { %p2077_p7 = pnand %p2076_p6, %p2070_p3 }
  0x11   :  { %2080 = shalt.err (!%p2077_p7)
}
  0x12   :  { %s2178_s19 = smov 64   ;;  %s2179_s20 = smov 4  }
  0x13   :  { %41 = dma.hbm_to_vmem [thread:$0]  %s2569_s1, 5120, %s36_s10, [#allocation7], %s2178_s19, %s2178_s19, %s2179_s20  }
  0x14   :  { %s2180_s23 = smov [#allocation3]   ;;  %s2081_s27 = scalar_lea.hbm %s2568_s0, 512 }
  0x15   :  { %s23_s24 = sshll.u32 %s2180_s23, 4  ;;  %p2082_p8 = scmp.ne.s32.totalorder %s2568_s0, %s2081_s27  ;;  %s24_s24 = int_to_ptr.vmem [resolvable:$true] %s23_s24 }
  0x16   :  { %p2085_p9 = scmp.lt.u32.totalorder %s2081_s27, %s2568_s0 }
  0x18   :  { %p2087_p10 = pnand %p2085_p9, %p2082_p8 }
  0x1a   :  { %2090 = shalt.err (!%p2087_p10)
}
  0x1b   :  { %s2091_s12 = scalar_lea.vmem %s24_s24, 512  ;;  %p2096_p12 = scmp.lt.s32.totalorder %s24_s24, %s24_s24 }
  0x1c   :  { %p2092_p11 = scmp.ne.s32.totalorder %s24_s24, %s2091_s12  ;;  %p2097_p13 = scmp.lt.s32.totalorder %s2091_s12, %s2091_s12 }
  0x1e   :  { %p2098_p0 = por %p2097_p13, %p2096_p12 }
  0x20   :  { %p2099_p1 = pnand %p2098_p0, %p2092_p11 }
  0x22   :  { %2102 = shalt.err (!%p2099_p1)
}
  0x23   :  { %s2181_s1 = smov 128   ;;  %s2182_s10 = smov 8  }
  0x24   :  { %29 = dma.hbm_to_vmem [thread:$0]  %s2568_s0, 512, %s24_s24, [#allocation4], %s2181_s1, %s2181_s1, %s2182_s10  }
  0x25   :  { %s2183_s15 = smov [#allocation8]   ;;  %s2184_s17 = smov [#allocation9]  }
  0x26   :  { %s49_s16 = sshll.u32 %s2183_s15, 4  ;;  %s63_s18 = sshll.u32 %s2184_s17, 4  ;;  %s50_s16 = int_to_ptr.vmem [resolvable:$true] %s49_s16  ;;  %s2268_s18 = int_to_ptr.vmem [resolvable:$true] %s63_s18 }
  0x27   :  { %s2103_s23 = scalar_lea.hbm %s2571_s3, 5120 }
  0x28   :  { %p2104_p2 = scmp.ne.s32.totalorder %s2571_s3, %s2103_s23  ;;  %p2107_p3 = scmp.lt.u32.totalorder %s2103_s23, %s2571_s3 }
  0x2a   :  { %p2109_p4 = pnand %p2107_p3, %p2104_p2 }
  0x2c   :  { %2112 = shalt.err (!%p2109_p4)
}
  0x2d   :  { %s2113_s0 = scalar_lea.vmem %s50_s16, 5120  ;;  %p2118_p6 = scmp.lt.s32.totalorder %s50_s16, %s50_s16 }
  0x2e   :  { %p2114_p5 = scmp.ne.s32.totalorder %s50_s16, %s2113_s0  ;;  %p2119_p7 = scmp.lt.s32.totalorder %s2113_s0, %s2113_s0 }
  0x30   :  { %p2120_p8 = por %p2119_p7, %p2118_p6 }
  0x32   :  { %p2121_p9 = pnand %p2120_p8, %p2114_p5 }
  0x34   :  { %2124 = shalt.err (!%p2121_p9)
}
  0x35   :  { %55 = dma.hbm_to_vmem [thread:$0]  %s2571_s3, 5120, %s50_s16, [#allocation7], %s2178_s19, %s2178_s19, %s2179_s20  }
  0x36   :  { %s2125_s12 = scalar_lea.hbm %s2573_s5, 1024 }
  0x37   :  { %p2126_p10 = scmp.ne.s32.totalorder %s2573_s5, %s2125_s12  ;;  %p2129_p11 = scmp.lt.u32.totalorder %s2125_s12, %s2573_s5 }
  0x39   :  { %p2131_p12 = pnand %p2129_p11, %p2126_p10 }
  0x3b   :  { %2134 = shalt.err (!%p2131_p12)
}
  0x3c   :  { %s2135_s21 = scalar_lea.vmem %s2268_s18, 1024  ;;  %p2140_p0 = scmp.lt.s32.totalorder %s2268_s18, %s2268_s18 }
  0x3d   :  { %p2136_p13 = scmp.ne.s32.totalorder %s2268_s18, %s2135_s21  ;;  %p2141_p1 = scmp.lt.s32.totalorder %s2135_s21, %s2135_s21 }
  0x3f   :  { %p2142_p2 = por %p2141_p1, %p2140_p0 }
  0x41   :  { %p2143_p3 = pnand %p2142_p2, %p2136_p13 }
  0x43   :  { %2146 = shalt.err (!%p2143_p3)
}
  0x44   :  { %69 = dma.hbm_to_vmem [thread:$0]  %s2573_s5, 1024, %s2268_s18, [#allocation10], %s2178_s19, %s2178_s19, %s2179_s20  }
  0x45   :  { %2169 = dma.done.wait [#allocation4], 512  }
  0x46   :  { %2170 = vsyncadd [#allocation4], 4294966784 }
  0x47   :  { %2171 = dma.done.wait [#allocation7], 10240  }
  0x48   :  { %2172 = vsyncadd [#allocation7], 4294957056 }
  0x49   :  { %2173 = dma.done.wait [#allocation10], 1024  }
  0x4a   :  { %2174 = vsyncadd [#allocation10], 4294966272  ;;  %v1963_v0 = vld [vmem:[#allocation6 + $0x40] sm:$0xff]   ;;  %v1967_v4 = vld [vmem:[#allocation6 + $0x48] sm:$0xff]   ;;  %v93_v14 = vlaneseq  ;;  %vm2185_vm8 = vmmov 1   ;;  %s2187_s0 = smov [#allocation11]  }
  0x4b   :  { %v1964_v1 = vld [vmem:[#allocation6] sm:$0xff]   ;;  %1750 = vmatprep.subr.bf16.mxu0 %v1963_v0  ;;  %v1968_v5 = vld [vmem:[#allocation6 + $0x8] sm:$0xff]   ;;  %v1971_v8 = vld [vmem:[#allocation6 + $0x50] sm:$0xff]   ;;  %s1593_s24 = sshll.u32 %s2187_s0, 4  ;;  %s1594_s24 = int_to_ptr.vmem [resolvable:$true] %s1593_s24 }
  0x4c   :  { %v1965_v2 = vld [vmem:[#allocation6 + $0xc0] sm:$0xff]   ;;  %1751 = vmatpush3.bf16.msra.mxu0 %v1964_v1  ;;  %v1969_v6 = vld [vmem:[#allocation6 + $0xc8] sm:$0xff]   ;;  %v1972_v9 = vld [vmem:[#allocation6 + $0x10] sm:$0xff]   ;;  %v2305_v19 = vshrl.u32 %v93_v14, 7  ;;  %p2152_p5 = scmp.lt.s32.totalorder %s1594_s24, %s1594_s24 }
  0x4d   :  { %v1966_v3 = vld [vmem:[#allocation6 + $0x80] sm:$0xff]   ;;  %1778 = vmatprep.subr.bf16.mxu1 %v1965_v2  ;;  %1752 = vmatprep.subr.bf16.mxu0 %v1967_v4  ;;  %v1970_v7 = vld [vmem:[#allocation6 + $0x88] sm:$0xff]   ;;  %v1973_v10 = vld [vmem:[#allocation6 + $0xd0] sm:$0xff]  }
  0x4e   :  { %1779 = vmatpush3.bf16.msra.mxu1 %v1966_v3  ;;  %v1974_v11 = vld [vmem:[#allocation6 + $0x90] sm:$0xff]   ;;  %v1975_v12 = vld [vmem:[#allocation6 + $0x58] sm:$0xff]   ;;  %v1979_v17 = vld [vmem:[#allocation6 + $0x60] sm:$0xff]   ;;  %v2308_v24 = vand.u32 15, %v2305_v19  ;;  %v95_v26 = vadd.s32 8, %v2305_v19  ;;  %vm179_vm0 = vcmp.lt.s32.totalorder %v2305_v19, 1 }
  0x4f   :  { %1780 = vmatprep.subr.bf16.mxu1 %v1969_v6  ;;  %v1976_v13 = vld [vmem:[#allocation6 + $0x18] sm:$0xff]   ;;  %v1980_v18 = vld [vmem:[#allocation6 + $0x20] sm:$0xff]   ;;  %v1983_v22 = vld [vmem:[#allocation6 + $0x68] sm:$0xff]   ;;  %v96_v28 = vadd.s32 16, %v2305_v19  ;;  %vm150_vm1 = vcmp.lt.s32.totalorder %v2305_v19, 2  ;;  %v97_v31 = vadd.s32 24, %v2305_v19 }
  0x50   :  { %1753 = vmatpush3.bf16.msra.mxu0 %v1968_v5  ;;  %v1977_v15 = vld [vmem:[#allocation6 + $0xd8] sm:$0xff]   ;;  %v1981_v20 = vld [vmem:[#allocation6 + $0xe0] sm:$0xff]   ;;  %v1984_v23 = vld [vmem:[#allocation6 + $0x28] sm:$0xff]   ;;  %v2315_v33 = vand.u32 15, %v95_v26  ;;  %vm212_vm2 = vcmp.lt.s32.totalorder %v2305_v19, 7  ;;  %vm184_vm3 = vcmp.ge.s32.totalorder %v2308_v24, 1 }
  0x51   :  { %1754 = vmatprep.subr.bf16.mxu0 %v1971_v8  ;;  %v1978_v16 = vld [vmem:[#allocation6 + $0x98] sm:$0xff]   ;;  %v1982_v21 = vld [vmem:[#allocation6 + $0xa0] sm:$0xff]   ;;  %v1985_v25 = vld [vmem:[#allocation6 + $0xe8] sm:$0xff]   ;;  %v2317_v35 = vand.u32 15, %v96_v28  ;;  %vm155_vm4 = vcmp.ge.s32.totalorder %v2308_v24, 2  ;;  %v2330_v42 = vand.u32 15, %v97_v31 }
  0x52   :  { %1781 = vmatpush3.bf16.msra.mxu1 %v1970_v7  ;;  %v1986_v27 = vld [vmem:[#allocation6 + $0xa8] sm:$0xff]   ;;  %v1987_v29 = vld [vmem:[#allocation6 + $0x70] sm:$0xff]   ;;  %v1991_v36 = vld [vmem:[#allocation6 + $0x78] sm:$0xff]   ;;  %vm222_vm5 = vcmp.lt.s32.totalorder %v2315_v33, 15  ;;  %vm241_vm7 = vcmp.lt.s32.totalorder %v2305_v19, 6 }
  0x53   :  { %1782 = vmatprep.subr.bf16.mxu1 %v1973_v10  ;;  %v1988_v30 = vld [vmem:[#allocation6 + $0x30] sm:$0xff]   ;;  %v1992_v37 = vld [vmem:[#allocation6 + $0x38] sm:$0xff]   ;;  %v2322_v39 = vld [vmem:[#allocation3] sm:$0xff]  ;;  %vm186_vm6 = vcmp.ge.s32.totalorder %v2317_v35, 1  ;;  %vm157_vm11 = vcmp.ge.s32.totalorder %v2317_v35, 2  ;;  %vm224_vm13 = vcmp.lt.s32.totalorder %v2330_v42, 15 }
  0x54   :  { %1755 = vmatpush3.bf16.msra.mxu0 %v1972_v9  ;;  %v1989_v32 = vld [vmem:[#allocation6 + $0xf0] sm:$0xff]   ;;  %v1993_v38 = vld [vmem:[#allocation6 + $0xf8] sm:$0xff]   ;;  %v2324_v40 = vld [vmem:[#allocation3 + $0x8] sm:$0xff]  ;;  %v175_v43 = vrot.slane %v2322_v39, 7  ;;  %v146_v48 = vrot.slane %v2322_v39, 6  ;;  %v208_v55 = vrot.slane %v2322_v39, 1 }
  0x55   :  { %1756 = vmatprep.subr.bf16.mxu0 %v1975_v12  ;;  %v1990_v34 = vld [vmem:[#allocation6 + $0xb0] sm:$0xff]   ;;  %v2326_v41 = vld [vmem:[#allocation3 + $0x18] sm:$0xff]  ;;  %v176_v44 = vrot.slane %v2324_v40, 7  ;;  %vm2339_vm9 = vmpackc.low %vm2185_vm8, %vm184_vm3  ;;  %v147_v49 = vrot.slane %v2324_v40, 6  ;;  %v209_v59 = vrot.slane %v2324_v40, 1  ;;  %v204_v3 = vpack.c.bf16 %v2324_v40, %v2322_v39 }
  0x56   :  { %1783 = vmatpush3.bf16.msra.mxu1 %v1974_v11  ;;  %v178_v45 = vrot.slane %v2326_v41, 7  ;;  %v1994_v46 = vld [vmem:[#allocation6 + $0xb8] sm:$0xff]   ;;  %v149_v50 = vrot.slane %v2326_v41, 6  ;;  %v1995_v51 = vld [vmem:[#allocation6 + $0x100] sm:$0xff]   ;;  %v2350_v54 = vld [vmem:[#allocation3 + $0x10] sm:$0xff]  ;;  %v211_v8 = vrot.slane %v2326_v41, 1 }
  0x57   :  { %1784 = vmatprep.subr.bf16.mxu1 %v1977_v15  ;;  %v182_v52 = vsel %vm179_vm0, %v175_v43, %v176_v44  ;;  %v153_v57 = vsel %vm150_vm1, %v146_v48, %v147_v49  ;;  %vm1705_vm10 = vmpackc.low %vm2185_vm8, %vm155_vm4  ;;  %v210_v61 = vrot.slane %v2350_v54, 1  ;;  %v1996_v62 = vld [vmem:[#allocation6 + $0x108] sm:$0xff]   ;;  %v215_v63 = vsel %vm212_vm2, %v208_v55, %v209_v59  ;;  %v1997_v9 = vld [vmem:[#allocation6 + $0x110] sm:$0xff]  }
  0x58   :  { %1757 = vmatpush3.bf16.msra.mxu0 %v1976_v13  ;;  %v183_v53 = vsel %vm179_vm0, %v178_v45, %v175_v43  ;;  %v154_v58 = vsel %vm150_vm1, %v149_v50, %v146_v48  ;;  %v177_v0 = vrot.slane %v2350_v54, 7  ;;  %vm2373_vm12 = vmpackc.low %vm222_vm5, %vm2185_vm8  ;;  %v148_v4 = vrot.slane %v2350_v54, 6  ;;  %v2002_v31 = vld [vmem:[#allocation6 + $0x138] sm:$0xff]   ;;  %v2005_v43 = vld [vmem:[#allocation8 + $0xc0] sm:$0xff]  }
  0x59   :  { %1758 = vmatprep.subr.bf16.mxu0 %v1979_v17  ;;  %v1703_v56 = vpack.c.bf16 %v182_v52, %v183_v53  ;;  %v1706_v60 = vpack.c.bf16 %v153_v57, %v154_v58  ;;  %v214_v1 = vsel %vm212_vm2, %v209_v59, %v210_v61  ;;  %vm1708_vm14 = vmpackc.low %vm2185_vm8, %vm186_vm6  ;;  %v237_v13 = vrot.slane %v2322_v39, 2  ;;  %v2008_v47 = vld [vmem:[#allocation8 + $0x8] sm:$0xff]   ;;  %v2014_v52 = vld [vmem:[#allocation8 + $0x90] sm:$0xff]  }
  0x5a   :  { %1785 = vmatpush3.bf16.msra.mxu1 %v1978_v16  ;;  %v1715_v5 = vpack.c.bf16 %v214_v1, %v215_v63  ;;  %v180_v6 = vsel %vm179_vm0, %v177_v0, %v178_v45  ;;  %v181_v7 = vsel %vm179_vm0, %v176_v44, %v177_v0  ;;  %v151_v11 = vsel %vm150_vm1, %v148_v4, %v149_v50  ;;  %vm1717_vm15 = vmpackc.low %vm224_vm13, %vm2185_vm8  ;;  %v2006_v44 = vld [vmem:[#allocation8 + $0x80] sm:$0xff]   ;;  %v2007_v45 = vld [vmem:[#allocation8 + $0x48] sm:$0xff]  }
  0x5b   :  { %1786 = vmatprep.subr.bf16.mxu1 %v1981_v20  ;;  %1704 = vmatprep.mubr.msk.bf16.mxu0 %vm2339_vm9, %v1703_v56  ;;  %v1709_v10 = vpack.c.bf16 %v180_v6, %v181_v7  ;;  %v152_v12 = vsel %vm150_vm1, %v147_v49, %v148_v4  ;;  %v213_v14 = vsel %vm212_vm2, %v210_v61, %v211_v8  ;;  %v238_v16 = vrot.slane %v2324_v40, 2  ;;  %v2010_v48 = vld [vmem:[#allocation8 + $0x88] sm:$0xff]   ;;  %v2011_v49 = vld [vmem:[#allocation8 + $0x50] sm:$0xff]   ;;  %v2015_v53 = vld [vmem:[#allocation8 + $0x58] sm:$0xff]  }
  0x5c   :  { %1759 = vmatpush3.bf16.msra.mxu0 %v1980_v18  ;;  %1716 = vmatprep.mubr.msk.bf16.mxu1 %vm2373_vm12, %v1715_v5  ;;  %v216_v15 = vsel %vm212_vm2, %v211_v8, %v208_v55  ;;  %vm251_vm0 = vcmp.lt.s32.totalorder %v2315_v33, 14  ;;  %v1712_v17 = vpack.c.bf16 %v151_v11, %v152_v12  ;;  %v239_v20 = vrot.slane %v2350_v54, 2  ;;  %vm1711_vm2 = vmpackc.low %vm2185_vm8, %vm157_vm11  ;;  %v2013_v50 = vld [vmem:[#allocation8 + $0xd0] sm:$0xff]   ;;  %v2017_v55 = vld [vmem:[#allocation8 + $0xd8] sm:$0xff]  }
  0x5d   :  { %1760 = vmatprep.subr.bf16.mxu0 %v1983_v22  ;;  %v1718_v18 = vpack.c.bf16 %v216_v15, %v213_v14  ;;  %v244_v22 = vsel %vm241_vm7, %v237_v13, %v238_v16  ;;  %vm1720_vm3 = vmpackc.low %vm251_vm0, %vm2185_vm8  ;;  %v205_v28 = vpack.c.bf16 %v2326_v41, %v2350_v54  ;;  %vm253_vm4 = vcmp.lt.s32.totalorder %v2330_v42, 14  ;;  %v2016_v56 = vld [vmem:[#allocation8 + $0x18] sm:$0xff]   ;;  %v2019_v58 = vld [vmem:[#allocation8 + $0x60] sm:$0xff]  }
  0x5e   :  { %1787 = vmatpush3.bf16.msra.mxu1 %v1982_v21  ;;  %v1998_v21 = vld [vmem:[#allocation6 + $0x118] sm:$0xff]   ;;  %vm1723_vm5 = vmpackc.low %vm253_vm4, %vm2185_vm8  ;;  %v2021_v59 = vld [vmem:[#allocation8 + $0xe0] sm:$0xff]   ;;  %vm782_vm6 = vcmp.lt.s32.totalorder %v2305_v19, 3  ;;  %vm787_vm9 = vcmp.ge.s32.totalorder %v2308_v24, 3  ;;  %vm825_vm11 = vcmp.lt.s32.totalorder %v2315_v33, 13  ;;  %vm758_vm12 = vcmp.ge.s32.totalorder %v2308_v24, 6 }
  0x5f   :  { %1788 = vmatprep.subr.bf16.mxu1 %v1985_v25  ;;  %v243_v25 = vsel %vm241_vm7, %v238_v16, %v239_v20  ;;  %v2018_v57 = vld [vmem:[#allocation8 + $0x98] sm:$0xff]   ;;  %v2022_v61 = vld [vmem:[#allocation8 + $0xa0] sm:$0xff]   ;;  %v2024_v63 = vld [vmem:[#allocation8 + $0x28] sm:$0xff]   ;;  %vm789_vm13 = vcmp.ge.s32.totalorder %v2317_v35, 3 }
  0x60   :  { %1761 = vmatpush3.bf16.msra.mxu0 %v1984_v23  ;;  %v240_v23 = vrot.slane %v2326_v41, 2  ;;  %v1721_v26 = vpack.c.bf16 %v243_v25, %v244_v22  ;;  %v2025_v0 = vld [vmem:[#allocation8 + $0xe8] sm:$0xff]   ;;  %v2027_v2 = vld [vmem:[#allocation8 + $0x70] sm:$0xff]   ;;  %v2031_v6 = vld [vmem:[#allocation8 + $0x78] sm:$0xff]  }
  0x61   :  { %1762 = vmatprep.subr.bf16.mxu0 %v1987_v29  ;;  %v2000_v29 = vld [vmem:[#allocation6 + $0x128] sm:$0xff]   ;;  %v2029_v4 = vld [vmem:[#allocation8 + $0xf0] sm:$0xff]   ;;  %v2032_v7 = vld [vmem:[#allocation8 + $0x38] sm:$0xff]  }
  0x62   :  { %1789 = vmatpush3.bf16.msra.mxu1 %v1986_v27  ;;  %v1999_v27 = vld [vmem:[#allocation6 + $0x120] sm:$0xff]   ;;  %v2026_v1 = vld [vmem:[#allocation8 + $0xa8] sm:$0xff]   ;;  %v2030_v5 = vld [vmem:[#allocation8 + $0xb0] sm:$0xff]  }
  0x63   :  { %1790 = vmatprep.subr.bf16.mxu1 %v1989_v32  ;;  %v242_v32 = vsel %vm241_vm7, %v239_v20, %v240_v23  ;;  %v2033_v8 = vld [vmem:[#allocation8 + $0xf8] sm:$0xff]   ;;  %v1607_v12 = vld [vmem:[%s2570_s2] ss:$0 sm:$0xff]  ;;  %vm1738_vm0 = vmpackc.low %vm825_vm11, %vm2185_vm8  ;;  %vm1503_vm11 = vcmask 1041408  }
  0x64   :  { %1763 = vmatpush3.bf16.msra.mxu0 %v1988_v30  ;;  %v2001_v30 = vld [vmem:[#allocation6 + $0x130] sm:$0xff]  }
  0x65   :  { %1764 = vmatprep.subr.bf16.mxu0 %v1991_v36 }
  0x66   :  { %1791 = vmatpush3.bf16.msra.mxu1 %v1990_v34  ;;  %v245_v34 = vsel %vm241_vm7, %v240_v23, %v237_v13 }
  0x67   :  { %1792 = vmatprep.subr.bf16.mxu1 %v1993_v38  ;;  %v1724_v36 = vpack.c.bf16 %v245_v34, %v242_v32  ;;  %v2004_v38 = vld [vmem:[#allocation8] sm:$0xff]  }
  0x68   :  { %1765 = vmatpush3.bf16.msra.mxu0 %v1992_v37  ;;  %v2003_v37 = vld [vmem:[#allocation8 + $0x40] sm:$0xff]  }
  0x69   :  { %1892 = vmatprep.subr.bf16.mxu0 %v1995_v51 }
  0x6a   :  { %1793 = vmatpush3.bf16.msra.mxu1 %v1994_v46  ;;  %v2009_v46 = vld [vmem:[#allocation8 + $0xc8] sm:$0xff]  }
  0x6b   :  { %1707 = vmatmul.mubr.msk.bf16.vlgmr.msra.gmra.mrb[0].mxu0 %vm1705_vm10, %v1706_v60  ;;  %1816 = vmatprep.subr.bf16.mxu1 %v2003_v37  ;;  %v2020_v60 = vld [vmem:[#allocation8 + $0x20] sm:$0xff]   ;;  %vm815_vm10 = vcmp.lt.s32.totalorder %v2305_v19, 5 }
  0x6c   :  { %1893 = vmatpush3.bf16.msra.mxu0 %v1995_v51  ;;  %1710 = vmatprep.mubr.msk.bf16.mxu0 %vm1708_vm14, %v1709_v10  ;;  %v2012_v51 = vld [vmem:[#allocation8 + $0x10] sm:$0xff]   ;;  %v2423_v10 = vld [vmem:[#allocation8 + $0x100] sm:$0xff]   ;;  %vm827_vm14 = vcmp.lt.s32.totalorder %v2330_v42, 13 }
  0x6d   :  { %1894 = vmatprep.subr.bf16.mxu0 %v1996_v62  ;;  %685 = vmatmul.mubr.bf16.vlgmr.msra.gmra.mrb[0].mxu1 %v204_v3  ;;  %v2028_v3 = vld [vmem:[#allocation8 + $0x30] sm:$0xff]   ;;  %vm1741_vm4 = vmpackc.low %vm827_vm14, %vm2185_vm8 }
  0x6e   :  { %1719 = vmatprep.mubr.msk.bf16.mxu1 %vm1717_vm15, %v1718_v18  ;;  %1817 = vmatpush3.bf16.msra.mxu1 %v2004_v38  ;;  %vm2460_vm15 = vmpackc.low %vm2185_vm8, %vm787_vm9 }
  0x6f   :  { %1818 = vmatprep.subr.bf16.mxu1 %v2007_v45 }
  0x70   :  { %1895 = vmatpush3.bf16.msra.mxu0 %v1996_v62  ;;  %v2023_v62 = vld [vmem:[#allocation8 + $0x68] sm:$0xff]  }
  0x71   :  { %1896 = vmatprep.subr.bf16.mxu0 %v1997_v9 }
  0x72   :  { %1819 = vmatpush3.bf16.msra.mxu1 %v2008_v47 }
  0x73   :  { %1713 = vmatmul.mubr.msk.bf16.gmra.mrb[4].mxu0 %vm1711_vm2, %v1712_v17  ;;  %1820 = vmatprep.subr.bf16.mxu1 %v2011_v49  ;;  %vm2482_vm2 = vmpackc.low %vm2185_vm8, %vm758_vm12 }
  0x74   :  { %1897 = vmatpush3.bf16.msra.mxu0 %v1997_v9  ;;  %1908 = vmatprep.mubr.msk.bf16.mxu0 %vm1720_vm3, %v1721_v26  ;;  %v2034_v9 = vld [vmem:[#allocation8 + $0xb8] sm:$0xff]   ;;  %vm2491_vm3 = vmpackc.low %vm2185_vm8, %vm789_vm13 }
  0x75   :  { %1898 = vmatprep.subr.bf16.mxu0 %v1998_v21  ;;  %693 = vmatmul.mubr.bf16.gmra.mrb[4].mxu1 %v205_v28 }
  0x76   :  { %1821 = vmatpush3.bf16.msra.mxu1 %v2012_v51 }
  0x77   :  { %1822 = vmatprep.subr.bf16.mxu1 %v2015_v53 }
  0x78   :  { %1899 = vmatpush3.bf16.msra.mxu0 %v1998_v21 }
  0x79   :  { %1900 = vmatprep.subr.bf16.mxu0 %v1999_v27 }
  0x7a   :  { %1823 = vmatpush3.bf16.msra.mxu1 %v2016_v56 }
  0x7b   :  { %1824 = vmatprep.subr.bf16.mxu1 %v2019_v58 }
  0x7c   :  { %1901 = vmatpush3.bf16.msra.mxu0 %v1999_v27 }
  0x7d   :  { %1902 = vmatprep.subr.bf16.mxu0 %v2000_v29 }
  0x7e   :  { %1825 = vmatpush3.bf16.msra.mxu1 %v2020_v60 }
  0x7f   :  { %1826 = vmatprep.subr.bf16.mxu1 %v2023_v62 }
  0x80   :  { %1903 = vmatpush3.bf16.msra.mxu0 %v2000_v29 }
  0x81   :  { %1904 = vmatprep.subr.bf16.mxu0 %v2001_v30 }
  0x82   :  { %1827 = vmatpush3.bf16.msra.mxu1 %v2024_v63 }
  0x83   :  { %1828 = vmatprep.subr.bf16.mxu1 %v2027_v2 }
  0x84   :  { %1905 = vmatpush3.bf16.msra.mxu0 %v2001_v30 }
  0x85   :  { %1906 = vmatprep.subr.bf16.mxu0 %v2002_v31 }
  0x86   :  { %1829 = vmatpush3.bf16.msra.mxu1 %v2028_v3 }
  0x87   :  { %1830 = vmatprep.subr.bf16.mxu1 %v2031_v6 }
  0x88   :  { %1907 = vmatpush3.bf16.msra.mxu0 %v2002_v31 }
  0x89   :  { %1844 = vmatprep.subr.bf16.mxu0 %v2005_v43 }
  0x8a   :  { %1831 = vmatpush3.bf16.msra.mxu1 %v2032_v7 }
  0x8b   :  { %1909 = vmatmul.mubr.msk.bf16.vlgmr.msra.gmra.mrb[8].mxu0 %vm1723_vm5, %v1724_v36  ;;  %1912 = vmatprep.subr.bf16.mxu1 %v2423_v10  ;;  %vm853_vm5 = vcmp.lt.s32.totalorder %v2315_v33, 10  ;;  %v2041_v33 = vld [vmem:[#allocation8 + $0x130] sm:$0xff]  }
  0x8c   :  { %1845 = vmatpush3.bf16.msra.mxu0 %v2006_v44  ;;  %vm1744_vm9 = vmpackc.low %vm853_vm5, %vm2185_vm8 }
  0x8d   :  { %1846 = vmatprep.subr.bf16.mxu0 %v2009_v46 }
  0x90   :  { %1847 = vmatpush3.bf16.msra.mxu0 %v2010_v48 }
  0x91   :  { %1848 = vmatprep.subr.bf16.mxu0 %v2013_v50 }
  0x94   :  { %1849 = vmatpush3.bf16.msra.mxu0 %v2014_v52 }
  0x95   :  { %1850 = vmatprep.subr.bf16.mxu0 %v2017_v55 }
  0x98   :  { %1851 = vmatpush3.bf16.msra.mxu0 %v2018_v57 }
  0x99   :  { %1852 = vmatprep.subr.bf16.mxu0 %v2021_v59 }
  0x9c   :  { %1853 = vmatpush3.bf16.msra.mxu0 %v2022_v61 }
  0x9d   :  { %1854 = vmatprep.subr.bf16.mxu0 %v2025_v0 }
  0xa0   :  { %1855 = vmatpush3.bf16.msra.mxu0 %v2026_v1 }
  0xa1   :  { %1856 = vmatprep.subr.bf16.mxu0 %v2029_v4 }
  0xa4   :  { %1857 = vmatpush3.bf16.msra.mxu0 %v2030_v5 }
  0xa5   :  { %1858 = vmatprep.subr.bf16.mxu0 %v2033_v8 }
  0xa8   :  { %1859 = vmatpush3.bf16.msra.mxu0 %v2034_v9 }
 0x13e   :  { %v1766_v11 = vpop.f32.mrb[0].mxu0 }
 0x13f   :  { %v1767_v13 = vpop.f32.mrb[1].mxu0 }
 0x140   :  { %v1768_v14 = vadd.f32 %v1767_v13, %v1766_v11  ;;  %v1769_v15 = vpop.f32.mrb[2].mxu0  ;;  %v1794_v18 = vpop.f32.mrb[0].mxu1 }
 0x141   :  { %v1770_v16 = vpop.f32.mrb[3].mxu0  ;;  %v1795_v21 = vpop.f32.mrb[1].mxu1 }
 0x142   :  { %v638_v17 = vadd.f32 %v1768_v14, %v1607_v12  ;;  %v1771_v20 = vadd.f32 %v1770_v16, %v1769_v15  ;;  %v1796_v23 = vadd.f32 %v1795_v21, %v1794_v18  ;;  %v1797_v25 = vpop.f32.mrb[2].mxu1 }
 0x143   :  { %v1798_v26 = vpop.f32.mrb[3].mxu1 }
 0x144   :  { %v641_v22 = vadd.f32 %v1771_v20, %v1607_v12  ;;  %v1799_v27 = vadd.f32 %v1798_v26, %v1797_v25  ;;  %v687_v29 = vadd.f32 %v1796_v23, %v638_v17 }
 0x146   :  { %v1772_v28 = vpop.f32.mrb[4].mxu0  ;;  %v690_v34 = vadd.f32 %v1799_v27, %v641_v22 }
 0x147   :  { %v1773_v30 = vpop.f32.mrb[5].mxu0 }
 0x148   :  { %v1774_v31 = vadd.f32 %v1773_v30, %v1772_v28  ;;  %v1775_v32 = vpop.f32.mrb[6].mxu0  ;;  %v1800_v38 = vpop.f32.mrb[4].mxu1  ;;  %v2036_v30 = vld [vmem:[#allocation8 + $0x108] sm:$0xff]  }
 0x149   :  { %v1776_v36 = vpop.f32.mrb[7].mxu0  ;;  %v1801_v44 = vpop.f32.mrb[5].mxu1 }
 0x14a   :  { %v646_v37 = vadd.f32 %v1774_v31, %v1607_v12  ;;  %v1777_v43 = vadd.f32 %v1776_v36, %v1775_v32  ;;  %v1802_v46 = vadd.f32 %v1801_v44, %v1800_v38  ;;  %v1803_v47 = vpop.f32.mrb[6].mxu1 }
 0x14b   :  { %v1804_v48 = vpop.f32.mrb[7].mxu1 }
 0x14c   :  { %v649_v45 = vadd.f32 %v1777_v43, %v1607_v12  ;;  %v1805_v49 = vadd.f32 %v1804_v48, %v1803_v47  ;;  %v695_v50 = vadd.f32 %v1802_v46, %v646_v37  ;;  %v2037_v46 = vld [vmem:[#allocation8 + $0x110] sm:$0xff]  }
 0x14e   :  { %v698_v51 = vadd.f32 %v1805_v49, %v649_v45 }
 0x15e   :  { %v1910_v52 = vpop.f32.mrb[8].mxu0 }
 0x15f   :  { %v2430_v53 = vadd.f32 %v1910_v52, %v695_v50  ;;  %v735_v55 = vpop.f32.mrb[9].mxu0  ;;  %v2040_v52 = vld [vmem:[#allocation8 + $0x128] sm:$0xff]  }
 0x160   :  { %v2435_v56 = vadd.f32 %v735_v55, %v687_v29  ;;  %v1911_v57 = vpop.f32.mrb[10].mxu0  ;;  %v2043_v55 = vld [vmem:[#allocation9] sm:$0xff]  }
 0x161   :  { %v2440_v58 = vadd.f32 %v1911_v57, %v698_v51  ;;  %v738_v59 = vpop.f32.mrb[11].mxu0  ;;  %v813_v60 = vrot.slane %v2430_v53, 3  ;;  %v780_v61 = vrot.slane %v2430_v53, 5  ;;  %v752_v62 = vrot.slane %v2430_v53, 2  ;;  %v2039_v51 = vld [vmem:[#allocation8 + $0x120] sm:$0xff]   ;;  %1932 = vmatprep.subr.bf16.mxu0 %v2043_v55  ;;  %v2045_v57 = vld [vmem:[#allocation9 + $0x10] sm:$0xff]  }
 0x162   :  { %v750_v63 = vrot.slane %v2435_v56, 2  ;;  %v739_v0 = vadd.f32 %v738_v59, %v690_v34  ;;  %v778_v1 = vrot.slane %v2435_v56, 5  ;;  %v811_v2 = vrot.slane %v2435_v56, 3  ;;  %v2047_v59 = vld [vmem:[#allocation9 + $0x20] sm:$0xff]  }
 0x163   :  { %v753_v3 = vrot.slane %v2440_v58, 2  ;;  %v843_v4 = vrot.slane %v2440_v58, 6  ;;  %v781_v5 = vrot.slane %v2440_v58, 5  ;;  %v814_v6 = vrot.slane %v2440_v58, 3 }
 0x164   :  { %v751_v7 = vrot.slane %v739_v0, 2  ;;  %v779_v8 = vrot.slane %v739_v0, 5  ;;  %v812_v9 = vrot.slane %v739_v0, 3  ;;  %v807_v11 = vpack.c.bf16 %v739_v0, %v2435_v56 }
 0x165   :  { %v757_v12 = vsel %vm241_vm7, %v753_v3, %v750_v63  ;;  %v786_v13 = vsel %vm782_vm6, %v781_v5, %v778_v1  ;;  %v783_v15 = vsel %vm782_vm6, %v780_v61, %v781_v5  ;;  %v816_v16 = vsel %vm815_vm10, %v813_v60, %v814_v6 }
 0x166   :  { %v756_v17 = vsel %vm241_vm7, %v750_v63, %v751_v7  ;;  %v785_v18 = vsel %vm782_vm6, %v778_v1, %v779_v8  ;;  %v817_v20 = vsel %vm815_vm10, %v812_v9, %v813_v60  ;;  %v818_v21 = vsel %vm815_vm10, %v811_v2, %v812_v9  ;;  %v2048_v60 = vld [vmem:[#allocation9 + $0x28] sm:$0xff]  }
 0x167   :  { %v1727_v22 = vpack.c.bf16 %v785_v18, %v786_v13  ;;  %v1739_v23 = vpack.c.bf16 %v817_v20, %v818_v21  ;;  %v1730_v26 = vpack.c.bf16 %v756_v17, %v757_v12  ;;  %v784_v27 = vsel %vm782_vm6, %v779_v8, %v780_v61  ;;  %v2050_v61 = vld [vmem:[#allocation9 + $0x38] sm:$0xff]   ;;  %v1698_v13 = vld [vmem:[%s2575_s7] ss:$0 sm:$0xff] }
 0x168   :  { %v1733_v29 = vpack.c.bf16 %v783_v15, %v784_v27  ;;  %v819_v24 = vsel %vm815_vm10, %v814_v6, %v811_v2  ;;  %v754_v31 = vsel %vm241_vm7, %v752_v62, %v753_v3  ;;  %v755_v32 = vsel %vm241_vm7, %v751_v7, %v752_v62  ;;  %v1648_v27 = vld [vmem:[%s2572_s4] ss:$0 sm:$0xff] }
 0x169   :  { %1728 = vmatprep.mubr.msk.bf16.mxu1 %vm2460_vm15, %v1727_v22  ;;  %1740 = vmatprep.mubr.msk.bf16.mxu0 %vm1738_vm0, %v1739_v23  ;;  %v1742_v34 = vpack.c.bf16 %v819_v24, %v816_v16  ;;  %v1736_v36 = vpack.c.bf16 %v754_v31, %v755_v32  ;;  %v808_v37 = vpack.c.bf16 %v2440_v58, %v2430_v53  ;;  %v840_v38 = vrot.slane %v2435_v56, 6  ;;  %v2044_v56 = vld [vmem:[#allocation9 + $0x8] sm:$0xff]   ;;  %v2046_v58 = vld [vmem:[#allocation9 + $0x18] sm:$0xff]  }
 0x16a   :  { %1731 = vmatmul.mubr.msk.bf16.vlgmr.msra.gmra.mrb[8].mxu1 %vm2482_vm2, %v1730_v26  ;;  %1287 = vmatmul.mubr.bf16.vlgmr.msra.gmra.mrb[12].mxu0 %v807_v11  ;;  %v841_v43 = vrot.slane %v739_v0, 6  ;;  %v842_v44 = vrot.slane %v2430_v53, 6  ;;  %vm760_vm7 = vcmp.ge.s32.totalorder %v2317_v35, 6  ;;  %v2038_v35 = vld [vmem:[#allocation8 + $0x118] sm:$0xff]   ;;  %v1474_v62 = vadd.f32 %v2324_v40, %v2322_v39  ;;  %v1700_v39 = vld [vmem:[%s2575_s7 + $0x1] ss:$0 sm:$0xff] }
 0x16b   :  { %1913 = vmatpush3.bf16.msra.mxu1 %v2423_v10  ;;  %1734 = vmatprep.mubr.msk.bf16.mxu1 %vm2491_vm3, %v1733_v29  ;;  %v847_v45 = vsel %vm150_vm1, %v843_v4, %v840_v38  ;;  %vm1735_vm6 = vmpackc.low %vm2185_vm8, %vm760_vm7  ;;  %v2042_v53 = vld [vmem:[#allocation8 + $0x138] sm:$0xff]   ;;  %v1481_v63 = vadd.f32 %v2326_v41, %v2350_v54 }
 0x16c   :  { %1743 = vmatprep.mubr.msk.bf16.mxu0 %vm1741_vm4, %v1742_v34  ;;  %1914 = vmatprep.subr.bf16.mxu1 %v2036_v30  ;;  %v844_v47 = vsel %vm150_vm1, %v842_v44, %v843_v4  ;;  %v845_v48 = vsel %vm150_vm1, %v841_v43, %v842_v44  ;;  %v846_v10 = vsel %vm150_vm1, %v840_v38, %v841_v43  ;;  %vm855_vm1 = vcmp.lt.s32.totalorder %v2330_v42, 10  ;;  %v2049_v42 = vld [vmem:[#allocation9 + $0x30] sm:$0xff]  }
 0x16d   :  { %v1745_v49 = vpack.c.bf16 %v845_v48, %v846_v10  ;;  %v1748_v50 = vpack.c.bf16 %v847_v45, %v844_v47  ;;  %vm1747_vm10 = vmpackc.low %vm855_vm1, %vm2185_vm8  ;;  %1933 = vmatpush3.bf16.msra.mxu0 %v2043_v55  ;;  %v1475_v0 = vrot.slane %v1474_v62, 4  ;;  %v1482_v1 = vrot.slane %v1481_v63, 4 }
 0x16e   :  { %1934 = vmatprep.subr.bf16.mxu0 %v2044_v56  ;;  %vm1500_vm8 = vcmask 1041409  }
 0x16f   :  { %1915 = vmatpush3.bf16.msra.mxu1 %v2036_v30  ;;  %v1476_v2 = vadd.f32 %v1475_v0, %v1474_v62  ;;  %v1483_v3 = vadd.f32 %v1482_v1, %v1481_v63 }
 0x170   :  { %1916 = vmatprep.subr.bf16.mxu1 %v2037_v46 }
 0x171   :  { %1935 = vmatpush3.bf16.msra.mxu0 %v2044_v56  ;;  %v1477_v4 = vrot.slane %v1476_v2, 2  ;;  %v1484_v5 = vrot.slane %v1483_v3, 2 }
 0x172   :  { %1737 = vmatmul.mubr.msk.bf16.gmra.mrb[12].mxu1 %vm1735_vm6, %v1736_v36  ;;  %1295 = vmatmul.mubr.bf16.gmra.mrb[16].mxu0 %v808_v37 }
 0x173   :  { %1917 = vmatpush3.bf16.msra.mxu1 %v2037_v46  ;;  %1928 = vmatprep.mubr.msk.bf16.mxu1 %vm1744_vm9, %v1745_v49  ;;  %v1478_v6 = vadd.f32 %v1477_v4, %v1476_v2  ;;  %v1485_v7 = vadd.f32 %v1484_v5, %v1483_v3 }
 0x174   :  { %1918 = vmatprep.subr.bf16.mxu1 %v2038_v35  ;;  %1936 = vmatprep.subr.bf16.mxu0 %v2045_v57 }
 0x175   :  { %1937 = vmatpush3.bf16.msra.mxu0 %v2045_v57  ;;  %v1479_v8 = vrot.slane %v1478_v6, 1  ;;  %v1486_v9 = vrot.slane %v1485_v7, 1 }
 0x176   :  { %1938 = vmatprep.subr.bf16.mxu0 %v2046_v58 }
 0x177   :  { %1919 = vmatpush3.bf16.msra.mxu1 %v2038_v35  ;;  %v1480_v11 = vadd.f32 %v1479_v8, %v1478_v6  ;;  %v1487_v12 = vadd.f32 %v1486_v9, %v1485_v7 }
 0x178   :  { %1920 = vmatprep.subr.bf16.mxu1 %v2039_v51 }
 0x179   :  { %1939 = vmatpush3.bf16.msra.mxu0 %v2046_v58  ;;  %v1488_v40 = vmul.f32 0.00390625, %v1480_v11  ;;  %v1489_v41 = vmul.f32 0.00390625, %v1487_v12  ;;  %v1699_v11 = vld [vmem:[%s2576_s8] ss:$0 sm:$0xff]  ;;  %v1701_v12 = vld [vmem:[%s2576_s8 + $0x1] ss:$0 sm:$0xff] }
 0x17a   :  { %1940 = vmatprep.subr.bf16.mxu0 %v2047_v59 }
 0x17b   :  { %1921 = vmatpush3.bf16.msra.mxu1 %v2039_v51  ;;  %v1495_v54 = vmul.f32 %v1698_v13, %v1488_v40  ;;  %v1496_v14 = vmul.f32 %v1698_v13, %v1489_v41  ;;  %v1520_v15 = vmul.f32 %v1700_v39, %v1488_v40  ;;  %v1521_v16 = vmul.f32 %v1700_v39, %v1489_v41 }
 0x17c   :  { %1922 = vmatprep.subr.bf16.mxu1 %v2040_v52 }
 0x17d   :  { %1941 = vmatpush3.bf16.msra.mxu0 %v2047_v59  ;;  %v1499_v17 = vrot.slane %v1496_v14, 7  ;;  %v1524_v18 = vrot.slane %v1521_v16, 7  ;;  %v2186_v16 = vmov 1966171168  }
 0x17e   :  { %1942 = vmatprep.subr.bf16.mxu0 %v2048_v60 }
 0x17f   :  { %1923 = vmatpush3.bf16.msra.mxu1 %v2040_v52  ;;  %v1501_v20 = vsel %vm1500_vm8, %v1499_v17, %v1495_v54  ;;  %v1525_v21 = vsel %vm1500_vm8, %v1524_v18, %v1520_v15  ;;  %v1545_v17 = vunpack.c.l.s4 %v2186_v16 }
 0x180   :  { %1924 = vmatprep.subr.bf16.mxu1 %v2041_v33  ;;  %v1504_v22 = vsel %vm1503_vm11, %v1501_v20, 0.0  ;;  %v1527_v23 = vsel %vm1503_vm11, %v1525_v21, 0.0 }
 0x181   :  { %1943 = vmatpush3.bf16.msra.mxu0 %v2048_v60  ;;  %1505 = vadd.xlane.f32.xlu0 %v1504_v22  ;;  %v1546_v18 = vunpack.c.0.s8 %v1545_v17 }
 0x182   :  { %1944 = vmatprep.subr.bf16.mxu0 %v2049_v42 }
 0x183   :  { %1925 = vmatpush3.bf16.msra.mxu1 %v2041_v33  ;;  %v1549_v20 = vsub.s32 %v1546_v18, %v2305_v19 }
 0x184   :  { %1926 = vmatprep.subr.bf16.mxu1 %v2042_v53 }
 0x185   :  { %1945 = vmatpush3.bf16.msra.mxu0 %v2049_v42  ;;  %1528 = vadd.xlane.f32.xlu0 %v1527_v23 }
 0x186   :  { %1946 = vmatprep.subr.bf16.mxu0 %v2050_v61 }
 0x187   :  { %1927 = vmatpush3.bf16.msra.mxu1 %v2042_v53 }
 0x189   :  { %1947 = vmatpush3.bf16.msra.mxu0 %v2050_v61 }
 0x18a   :  { %1929 = vmatmul.mubr.msk.bf16.vlgmr.msra.gmra.mrb[16].mxu1 %vm1747_vm10, %v1748_v50 }
 0x20e   :  { %v1506_v6 = vpop.xlane.xlu0 %1505 }
 0x20f   :  { %v1507_v8 = vmax.f32 %v1506_v6, 0.0 }
 0x211   :  { %v1513_v13 = vmul.f32 %v1699_v11, %v1507_v8 }
 0x212   :  { %v1529_v7 = vpop.xlane.xlu0 %1528 }
 0x213   :  { %v1530_v9 = vmax.f32 %v1529_v7, 0.0 }
 0x215   :  { %v1536_v39 = vmul.f32 %v1701_v12, %v1530_v9 }
 0x217   :  { %v1537_v40 = vadd.f32 %v1536_v39, %v1513_v13 }
 0x219   :  { %v1538_v41 = vsub.f32 0.0, %v1537_v40 }
 0x21b   :  { %v1539_v54 = vmul.f32 1.442695, %v1538_v41 }
 0x21d   :  { %2051 = vpow2.f32 %v1539_v54 }
 0x227   :  { %v2052_v14 = vpop.eup %2051 }
 0x228   :  { %v1541_v15 = vadd.f32 1.0, %v2052_v14 }
 0x22a   :  { %2053 = vrcp.f32 %v1541_v15 }
 0x234   :  { %v2054_v21 = vpop.eup %2053 }
 0x235   :  { %v1550_v22 = vrot.slane %v2054_v21, %v1549_v20 }
 0x237   :  { %v1551_v23 = vcombine.high %v1550_v22, %v1550_v22 }
 0x23d   :  { %v1832_v25 = vpop.f32.mrb[8].mxu1  ;;  %v1860_v26 = vpop.f32.mrb[12].mxu0 }
 0x23e   :  { %v1833_v28 = vpop.f32.mrb[9].mxu1  ;;  %v1861_v29 = vpop.f32.mrb[13].mxu0 }
 0x23f   :  { %v1834_v24 = vadd.f32 %v1833_v28, %v1832_v25  ;;  %v1862_v30 = vadd.f32 %v1861_v29, %v1860_v26  ;;  %v1835_v31 = vpop.f32.mrb[10].mxu1  ;;  %v1863_v32 = vpop.f32.mrb[14].mxu0  ;;  %v1565_v25 = vrot.slane %v1551_v23, %v1549_v20  ;;  %v1568_v26 = vsub.s32 0, %v2305_v19 }
 0x240   :  { %v1836_v34 = vpop.f32.mrb[11].mxu1  ;;  %v1864_v36 = vpop.f32.mrb[15].mxu0  ;;  %v1558_v28 = vrot.slane %v1550_v22, %v1549_v20 }
 0x241   :  { %v1240_v37 = vadd.f32 %v1834_v24, %v1648_v27  ;;  %v1837_v38 = vadd.f32 %v1836_v34, %v1835_v31  ;;  %v1865_v43 = vadd.f32 %v1864_v36, %v1863_v32  ;;  %v1573_v29 = vrot.slane %v1565_v25, %v1568_v26 }
 0x242   :  { %v1569_v34 = vrot.slane %v1558_v28, %v1568_v26 }
 0x243   :  { %v1243_v44 = vadd.f32 %v1837_v38, %v1648_v27  ;;  %v1289_v45 = vadd.f32 %v1862_v30, %v1240_v37 }
 0x245   :  { %v1838_v46 = vpop.f32.mrb[12].mxu1  ;;  %v1866_v47 = vpop.f32.mrb[16].mxu0  ;;  %v1292_v48 = vadd.f32 %v1865_v43, %v1243_v44 }
 0x246   :  { %v1839_v10 = vpop.f32.mrb[13].mxu1  ;;  %v1867_v49 = vpop.f32.mrb[17].mxu0 }
 0x247   :  { %v1840_v50 = vadd.f32 %v1839_v10, %v1838_v46  ;;  %v1868_v35 = vadd.f32 %v1867_v49, %v1866_v47  ;;  %v1841_v51 = vpop.f32.mrb[14].mxu1  ;;  %v1869_v52 = vpop.f32.mrb[18].mxu0  ;;  %v2055_v46 = vld [vmem:[#allocation3 + $0x10] sm:$0xff] }
 0x248   :  { %v1842_v33 = vpop.f32.mrb[15].mxu1  ;;  %v1870_v53 = vpop.f32.mrb[19].mxu0 }
 0x249   :  { %v1248_v55 = vadd.f32 %v1840_v50, %v1648_v27  ;;  %v1843_v56 = vadd.f32 %v1842_v33, %v1841_v51  ;;  %v1871_v57 = vadd.f32 %v1870_v53, %v1869_v52  ;;  %v2057_v50 = vld [vmem:[#allocation3 + $0x18] sm:$0xff]  ;;  %v2058_v51 = vld [vmem:[#allocation3 + $0x8] sm:$0xff] }
 0x24b   :  { %v1251_v58 = vadd.f32 %v1843_v56, %v1648_v27  ;;  %v1297_v59 = vadd.f32 %v1868_v35, %v1248_v55  ;;  %v1689_v27 = vld [vmem:[%s2574_s6] ss:$0 sm:$0xff]  ;;  %s2147_s6 = scalar_lea.vmem %s1594_s24, 512 }
 0x24c   :  { %p2148_p4 = scmp.ne.s32.totalorder %s1594_s24, %s2147_s6  ;;  %p2153_p6 = scmp.lt.s32.totalorder %s2147_s6, %s2147_s6 }
 0x24d   :  { %v1300_v60 = vadd.f32 %v1871_v57, %v1251_v58 }
 0x24e   :  { %p2154_p7 = por %p2153_p6, %p2152_p5 }
 0x250   :  { %p2155_p8 = pnand %p2154_p7, %p2148_p4 }
 0x25d   :  { %v1930_v42 = vpop.f32.mrb[16].mxu1 }
 0x25e   :  { %v1346_v61 = vadd.f32 %v1930_v42, %v1297_v59  ;;  %v1337_v62 = vpop.f32.mrb[17].mxu1 }
 0x25f   :  { %v1338_v63 = vadd.f32 %v1337_v62, %v1289_v45  ;;  %v1931_v0 = vpop.f32.mrb[18].mxu1 }
 0x260   :  { %v1349_v1 = vadd.f32 %v1931_v0, %v1300_v60  ;;  %v1340_v2 = vpop.f32.mrb[19].mxu1 }
 0x261   :  { %v1341_v3 = vadd.f32 %v1340_v2, %v1292_v48  ;;  %v2056_v48 = vld [vmem:[#allocation3] sm:$0xff] }
 0x262   :  { %v1353_v4 = vpack.c.bf16 %v1349_v1, %v1346_v61 }
 0x263   :  { %v1352_v5 = vpack.c.bf16 %v1341_v3, %v1338_v63 }
 0x265   :  { %1948 = vmatprep.mubr.bf16.mxu0 %v1352_v5 }
 0x266   :  { %1949 = vmatmul.mubr.bf16.vlgmr.msra.gmra.mrb[20].mxu0 %v1353_v4 }
 0x339   :  { %v1950_v24 = vpop.f32.mrb[20].mxu0 }
 0x33a   :  { %v1468_v30 = vadd.f32 %v1950_v24, %v1689_v27  ;;  %v1459_v31 = vpop.f32.mrb[21].mxu0 }
 0x33b   :  { %v1460_v32 = vadd.f32 %v1689_v27, %v1459_v31  ;;  %v1951_v36 = vpop.f32.mrb[22].mxu0 }
 0x33c   :  { %v1578_v37 = vmul.f32 %v1573_v29, %v1468_v30  ;;  %v1471_v38 = vadd.f32 %v1951_v36, %v1689_v27  ;;  %v1462_v43 = vpop.f32.mrb[23].mxu0 }
 0x33d   :  { %v1576_v44 = vmul.f32 %v1569_v34, %v1460_v32  ;;  %v1463_v45 = vadd.f32 %v1689_v27, %v1462_v43 }
 0x33e   :  { %v1582_v47 = vmul.f32 %v2055_v46, %v1578_v37  ;;  %v1579_v19 = vmul.f32 %v1573_v29, %v1471_v38 }
 0x33f   :  { %v1580_v10 = vmul.f32 %v2056_v48, %v1576_v44  ;;  %v1577_v49 = vmul.f32 %v1569_v34, %v1463_v45 }
 0x340   :  { %1586 = vst [vmem:[#allocation11 + $0x10] sm:$0xff] %v1582_v47  ;;  %v1583_v35 = vmul.f32 %v2057_v50, %v1579_v19 }
 0x341   :  { %1584 = vst [vmem:[#allocation11] sm:$0xff] %v1580_v10  ;;  %v1581_v52 = vmul.f32 %v2058_v51, %v1577_v49 }
 0x342   :  { %1587 = vst [vmem:[#allocation11 + $0x18] sm:$0xff] %v1583_v35 }
 0x343   :  { %1585 = vst [vmem:[#allocation11 + $0x8] sm:$0xff] %v1581_v52 }
 0x344   :  { %2158 = shalt.err (!%p2155_p8)
}
 0x345   :  { %s2159_s11 = scalar_lea.hbm %s2577_s9, 512 }
 0x346   :  { %p2160_p9 = scmp.ne.s32.totalorder %s2577_s9, %s2159_s11  ;;  %p2163_p10 = scmp.lt.u32.totalorder %s2159_s11, %s2577_s9 }
 0x348   :  { %p2165_p11 = pnand %p2163_p10, %p2160_p9 }
 0x34a   :  { %2168 = shalt.err (!%p2165_p11)
}
 0x34b   :  { %1599 = dma.vmem_to_hbm [thread:$0]  %s1594_s24, 512, %s2577_s9, [#allocation5], %s2181_s1, %s2181_s1, %s2182_s10  }
 0x34c   :  { %2175 = dma.done.wait [#allocation5], 512  }
 0x34d   :  { %2176 = vsyncadd [#allocation5], 4294966784 }
 0x34e   :  { %1603 = vsyncpa [#allocation4], 1 }
 0x34f   :  { %1604 = vsyncpa [#allocation7], 1 }
 0x350   :  { %1605 = vsyncpa [#allocation10], 1 }
 0x351   :  { %1606 = vsyncpa [#allocation5], 1 }

</bundles_post_ra>
